<compile_context>
chip_gen: v5e
topology: v5e:2x2
jax: 0.10.0
libtpu: 0.0.40
codegen_flags: <defaults>
</compile_context>

<pallas_src>
import functools
import math

import jax
import jax.numpy as jnp
from jax.experimental import pallas as pl
from jax.experimental.pallas import tpu as pltpu


# ---------------------------------------------------------------------------
# Kernel A: K (= V) projection into (B, n_head, S, d) bf16.
# ---------------------------------------------------------------------------
def _kproj_kernel(x_ref, wkT_ref, bk_ref, k_ref, *, h_tile, dim_head):
    tk = x_ref.shape[1]
    xb = x_ref[0].astype(jnp.bfloat16)                                  # (tk, H)
    k = jnp.dot(xb, wkT_ref[...],
                preferred_element_type=jnp.float32) + bk_ref[...]       # (tk, h*d)
    k_ref[0] = (k.reshape(tk, h_tile, dim_head)
                 .transpose(1, 0, 2)
                 .astype(k_ref.dtype))                                  # (h, tk, d)


# ---------------------------------------------------------------------------
# Kernel B: attention (+ residual + LayerNorm1); scores materialized per
# head block; O-projection accumulated across the head-block grid axis.
# ---------------------------------------------------------------------------
def _attention_kernel(xq_ref, k_ref, amask_ref, pmask_ref,
                      wqT_ref, bq_ref, woT_ref, bo_ref, g1_ref, beta1_ref,
                      x1_ref, scores_ref, acc_ref,
                      *, h_tile, dim_head, eps):
    hi = pl.program_id(2)
    tq = xq_ref.shape[1]

    xq32 = xq_ref[0]                                                    # (tq, H) f32
    xq16 = xq32.astype(jnp.bfloat16)

    # 1/sqrt(dim_head) is pre-folded into wqT / bq on the host.
    q = jnp.dot(xq16, wqT_ref[...],
                preferred_element_type=jnp.float32) + bq_ref[...]       # (tq, h*d)
    qh = (q.reshape(tq, h_tile, dim_head)
           .transpose(1, 0, 2)
           .astype(jnp.bfloat16))                                       # (h, tq, d)
    kh = k_ref[0]                                                       # (h, S, d)

    logits = jnp.einsum('hqd,hkd->hqk', qh, kh,
                        preferred_element_type=jnp.float32) + amask_ref[0]
    m = jnp.max(logits, axis=-1, keepdims=True)
    e = jnp.exp(logits - m)
    probs = e * pl.reciprocal(jnp.sum(e, axis=-1, keepdims=True), approx=True)
    sc = probs * pmask_ref[0]                     # softmax, then * padding_mask
    scores_ref[0] = sc.astype(scores_ref.dtype)   # lane-dense store (bf16 default)

    # V = K (module bug reproduced exactly).
    att = jnp.einsum('hqk,hkd->hqd', sc.astype(jnp.bfloat16), kh,
                     preferred_element_type=jnp.float32)                # (h, tq, d)
    attended = (att.transpose(1, 0, 2)
                  .reshape(tq, h_tile * dim_head)
                  .astype(jnp.bfloat16))                                # (tq, h*d)
    contrib = jnp.dot(attended, woT_ref[...],
                      preferred_element_type=jnp.float32)               # (tq, H)

    @pl.when(hi == 0)
    def _():
        acc_ref[...] = jnp.zeros_like(acc_ref)

    acc_ref[...] += contrib

    @pl.when(hi == pl.num_programs(2) - 1)
    def _():
        r1 = acc_ref[...] + bo_ref[...] + xq32       # O bias + residual 1
        mu = jnp.mean(r1, axis=-1, keepdims=True)
        var = jnp.mean((r1 - mu) ** 2, axis=-1, keepdims=True)
        x1_ref[0] = ((r1 - mu) * jax.lax.rsqrt(var + eps)
                     * g1_ref[...] + beta1_ref[...]).astype(x1_ref.dtype)


# ---------------------------------------------------------------------------
# Kernel C: feedforward (n_ff streamed in chunks) + residual + LayerNorm2.
# ---------------------------------------------------------------------------
def _ffn_kernel(x1_ref, w1T_ref, b1_ref, w2T_ref, b2_ref, g2_ref, beta2_ref,
                out_ref, acc_ref, *, eps):
    fi = pl.program_id(2)

    x1 = x1_ref[0]                                                      # (tq, H) f32
    h = jnp.maximum(
        jnp.dot(x1.astype(jnp.bfloat16), w1T_ref[...],
                preferred_element_type=jnp.float32) + b1_ref[...], 0.0)
    contrib = jnp.dot(h.astype(jnp.bfloat16), w2T_ref[...],
                      preferred_element_type=jnp.float32)               # (tq, H)

    @pl.when(fi == 0)
    def _():
        acc_ref[...] = jnp.zeros_like(acc_ref)

    acc_ref[...] += contrib

    @pl.when(fi == pl.num_programs(2) - 1)
    def _():
        r2 = acc_ref[...] + b2_ref[...] + x1         # FFN bias + residual 2
        mu = jnp.mean(r2, axis=-1, keepdims=True)
        var = jnp.mean((r2 - mu) ** 2, axis=-1, keepdims=True)
        out_ref[0] = ((r2 - mu) * jax.lax.rsqrt(var + eps)
                      * g2_ref[...] + beta2_ref[...]).astype(out_ref.dtype)


# ---------------------------------------------------------------------------
# Host-side helpers.
# ---------------------------------------------------------------------------
def _prep_mask(mask, B, n_head, S):
    """Normalize a mask broadcastable to (B, n_head, S, S) into compact 4-D."""
    m = jnp.asarray(mask, jnp.float32)
    assert m.ndim <= 4
    m = m.reshape((1,) * (4 - m.ndim) + m.shape)
    Bm, Hm, Qm, Km = m.shape
    assert Bm in (1, B) and Hm in (1, n_head) and Qm in (1, S) and Km in (1, S)
    if Km != S:  # key axis must be full-width inside the kernel
        m = jnp.broadcast_to(m, (Bm, Hm, Qm, S))
    return m


def _mask_spec(m, n_head, h_tile, S, tq):
    Bm, Hm, Qm, _ = m.shape
    hblk = h_tile if Hm == n_head else 1
    qblk = tq if Qm == S else 1

    def idx(b, qi, hi, _b=(Bm > 1), _h=(Hm > 1), _q=(Qm > 1)):
        return (b if _b else 0, hi if _h else 0, qi if _q else 0, 0)

    return pl.BlockSpec((1, hblk, qblk, S), idx)


def _pick_tile(dim, target, quantum):
    """Largest divisor of `dim` that is a multiple of `quantum` and <= target."""
    best = None
    for c in range(quantum, min(dim, target) + 1, quantum):
        if dim % c == 0:
            best = c
    return best if best is not None else dim


def _pick_h_tile(n_head, dim_head):
    """Smallest head block whose lane width (h_tile*d) is a multiple of 128."""
    for h in range(1, n_head + 1):
        if n_head % h == 0 and (h * dim_head) % 128 == 0:
            return h
    return n_head  # tiny dim_head: take all heads (block == full lane width)


def _vmem_budget(nbytes):
    # Computed per-call budget with headroom, clamped to a sane range.
    # TODO(synk): derive per-generation (v7x has 64 MiB physical VMEM).
    return int(min(100 * 2 ** 20, max(32 * 2 ** 20, nbytes)))


# ---------------------------------------------------------------------------
# Wrapper: full TransformerLayer (norm='layer') forward.
# ---------------------------------------------------------------------------
def transformer_layer(x, attention_mask, padding_mask, params, *, n_head,
                      tq=None, h_tile=None, tf=None,
                      scores_dtype=jnp.bfloat16):
    """Returns (out, scores) matching the PyTorch module's eval forward."""
    B, S, H = x.shape
    d = H // n_head
    assert n_head * d == H
    n_ff = params["w1"].shape[0]

    # --- tiling knobs ------------------------------------------------------
    if tq is None:
        # TODO(synk): prefer 128 on v5e (4x128 MXU); 256 suits v6e/v7x.
        tq = _pick_tile(S, 256, 8)
    assert S % tq == 0 and (tq % 8 == 0 or tq == S)
    if h_tile is None:
        h_tile = _pick_h_tile(n_head, d)
    assert n_head % h_tile == 0 and ((h_tile * d) % 128 == 0 or h_tile * d == H)
    if tf is None:
        tf = _pick_tile(n_ff, 512, 128) if n_ff >= 128 else n_ff
    assert n_ff % tf == 0

    nq, nh, nf = S // tq, n_head // h_tile, n_ff // tf
    hd = h_tile * d
    eps = 1e-5
    f32, bf16 = jnp.float32, jnp.bfloat16
    sc_bytes = jnp.dtype(scores_dtype).itemsize

    # --- host-side weight layout prep --------------------------------------
    # nn.Linear weight is (out, in); y = x @ W.T + b.  Output features are
    # already head-major, so W.T column blocks == per-head-block slices.
    def wT(p, scale=1.0):
        return (jnp.asarray(p, f32).T * scale).astype(bf16)

    def row(p, scale=1.0):
        return (jnp.asarray(p, f32) * scale).reshape(1, -1)

    inv_sqrt_d = 1.0 / math.sqrt(d)
    amask = _prep_mask(attention_mask, B, n_head, S)
    pmask = _prep_mask(padding_mask, B, n_head, S)

    def const_vec_spec(shape):
        # Constant-index bias / LayerNorm vectors: single VMEM buffer.
        return pl.BlockSpec(shape, lambda b, i, j: (0, 0),
                            pipeline_mode=pl.Buffered(1))

    # ========================================================================
    # A) K (= V) projection -> (B, n_head, S, d) bf16 in HBM.
    # ========================================================================
    est_a = (2 * tq * H * 4 + 2 * H * hd * 2 + 2 * hd * 4
             + 2 * h_tile * tq * d * 2 + 2 * tq * hd * 4)
    kcache = pl.pallas_call(
        functools.partial(_kproj_kernel, h_tile=h_tile, dim_head=d),
        grid=(B, nq, nh),
        in_specs=[
            pl.BlockSpec((1, tq, H), lambda b, si, hi: (b, si, 0)),
            pl.BlockSpec((H, hd), lambda b, si, hi: (0, hi)),
            pl.BlockSpec((1, hd), lambda b, si, hi: (0, hi)),
        ],
        out_specs=pl.BlockSpec((1, h_tile, tq, d),
                               lambda b, si, hi: (b, hi, si, 0)),
        out_shape=jax.ShapeDtypeStruct((B, n_head, S, d), bf16),
        cost_estimate=pl.CostEstimate(
            flops=2 * B * S * H * H,
            transcendentals=0,
            bytes_accessed=B * S * H * (4 + 2) + H * H * 2),
        compiler_params=pltpu.CompilerParams(
            dimension_semantics=("parallel", "parallel", "arbitrary"),
            vmem_limit_bytes=_vmem_budget(int(1.5 * est_a))),
    )(x, wT(params["wk"]), row(params["bk"]))

    # ========================================================================
    # B) attention + residual + LayerNorm1; scores per head block.
    # ========================================================================
    amask_blk = 4 * (h_tile if amask.shape[1] > 1 else 1) * \
        (tq if amask.shape[2] > 1 else 1) * S
    pmask_blk = 4 * (h_tile if pmask.shape[1] > 1 else 1) * \
        (tq if pmask.shape[2] > 1 else 1) * S
    est_b = (2 * tq * H * 4 + 2 * h_tile * S * d * 2
             + 2 * h_tile * tq * S * sc_bytes + 2 * tq * H * 4
             + 4 * H * hd * 2 + 2 * (amask_blk + pmask_blk)
             + 6 * H * 4 + tq * H * 4
             + 4 * h_tile * tq * S * 4)
    x1, scores = pl.pallas_call(
        functools.partial(_attention_kernel, h_tile=h_tile, dim_head=d, eps=eps),
        grid=(B, nq, nh),
        in_specs=[
            pl.BlockSpec((1, tq, H), lambda b, qi, hi: (b, qi, 0)),            # x
            pl.BlockSpec((1, h_tile, S, d), lambda b, qi, hi: (b, hi, 0, 0)),  # K(=V)
            _mask_spec(amask, n_head, h_tile, S, tq),
            _mask_spec(pmask, n_head, h_tile, S, tq),
            pl.BlockSpec((H, hd), lambda b, qi, hi: (0, hi)),                  # wqT
            pl.BlockSpec((1, hd), lambda b, qi, hi: (0, hi)),                  # bq
            pl.BlockSpec((hd, H), lambda b, qi, hi: (hi, 0)),                  # woT
            const_vec_spec((1, H)),                                            # bo
            const_vec_spec((1, H)),                                            # g1
            const_vec_spec((1, H)),                                            # beta1
        ],
        out_specs=(
            pl.BlockSpec((1, tq, H), lambda b, qi, hi: (b, qi, 0)),              # x1
            pl.BlockSpec((1, h_tile, tq, S), lambda b, qi, hi: (b, hi, qi, 0)),  # scores
        ),
        out_shape=(
            jax.ShapeDtypeStruct((B, S, H), f32),
            jax.ShapeDtypeStruct((B, n_head, S, S), scores_dtype),
        ),
        scratch_shapes=[pltpu.VMEM((tq, H), f32)],
        cost_estimate=pl.CostEstimate(
            flops=B * (4 * S * H * H + 4 * S * S * H),
            transcendentals=B * n_head * S * S,
            bytes_accessed=(B * S * H * 4 * 2 + B * nq * S * H * 2
                            + B * n_head * S * S * sc_bytes + 2 * H * H * 2)),
        compiler_params=pltpu.CompilerParams(
            dimension_semantics=("parallel", "parallel", "arbitrary"),
            vmem_limit_bytes=_vmem_budget(int(1.5 * est_b))),
    )(x, kcache, amask, pmask,
      wT(params["wq"], inv_sqrt_d), row(params["bq"], inv_sqrt_d),
      wT(params["wo"]), row(params["bo"]),
      row(params["g1"]), row(params["beta1"]))

    # ========================================================================
    # C) feedforward (streamed over n_ff) + residual + LayerNorm2.
    # ========================================================================
    est_c = (2 * tq * H * 4 + 2 * H * tf * 2 + 2 * tf * 4 + 2 * tf * H * 2
             + 6 * H * 4 + 2 * tq * H * 4 + tq * H * 4 + 2 * tq * tf * 4)
    out = pl.pallas_call(
        functools.partial(_ffn_kernel, eps=eps),
        grid=(B, nq, nf),
        in_specs=[
            pl.BlockSpec((1, tq, H), lambda b, qi, fi: (b, qi, 0)),   # x1
            pl.BlockSpec((H, tf), lambda b, qi, fi: (0, fi)),         # w1T chunk
            pl.BlockSpec((1, tf), lambda b, qi, fi: (0, fi)),         # b1 chunk
            pl.BlockSpec((tf, H), lambda b, qi, fi: (fi, 0)),         # w2T chunk
            const_vec_spec((1, H)),                                   # b2
            const_vec_spec((1, H)),                                   # g2
            const_vec_spec((1, H)),                                   # beta2
        ],
        out_specs=pl.BlockSpec((1, tq, H), lambda b, qi, fi: (b, qi, 0)),
        out_shape=jax.ShapeDtypeStruct((B, S, H), f32),
        scratch_shapes=[pltpu.VMEM((tq, H), f32)],
        cost_estimate=pl.CostEstimate(
            flops=4 * B * S * H * n_ff,
            transcendentals=0,
            bytes_accessed=B * S * H * 4 * 2 + 2 * H * n_ff * 2 * B * nq),
        compiler_params=pltpu.CompilerParams(
            dimension_semantics=("parallel", "parallel", "arbitrary"),
            vmem_limit_bytes=_vmem_budget(int(1.5 * est_c))),
    )(x1, wT(params["w1"]), row(params["b1"]),
      wT(params["w2"]), row(params["b2"]),
      row(params["g2"]), row(params["beta2"]))

    return out, scores


# ---------------------------------------------------------------------------
# Pure-JAX (f32) reference matching the PyTorch forward (eval mode).
# ---------------------------------------------------------------------------
def reference(x, amask, pmask, p, *, n_head):
    B, S, H = x.shape
    d = H // n_head
    prec = jax.lax.Precision.HIGHEST

    def lin(v, w, b):
        return jnp.dot(v, w.T, precision=prec) + b

    q = lin(x, p["wq"], p["bq"]).reshape(B, S, n_head, d).transpose(0, 2, 1, 3)
    k = lin(x, p["wk"], p["bk"]).reshape(B, S, n_head, d).transpose(0, 2, 1, 3)
    v = k  # module bug: V_x uses self.K
    logits = amask + jnp.einsum("bhqd,bhkd->bhqk", q, k,
                                precision=prec) / math.sqrt(d)
    scores = jax.nn.softmax(logits, axis=-1) * pmask
    att = jnp.einsum("bhqk,bhkd->bhqd", scores, v, precision=prec)
    att = att.transpose(0, 2, 1, 3).reshape(B, S, H)
    ao = lin(att, p["wo"], p["bo"])

    def ln(v, g, b):
        mu = jnp.mean(v, axis=-1, keepdims=True)
        var = jnp.mean((v - mu) ** 2, axis=-1, keepdims=True)
        return (v - mu) / jnp.sqrt(var + 1e-5) * g + b

    x1 = ln(ao + x, p["g1"], p["beta1"])
    ff = lin(jnp.maximum(lin(x1, p["w1"], p["b1"]), 0.0), p["w2"], p["b2"])
    x2 = ln(ff + x1, p["g2"], p["beta2"])
    return x2, scores


if __name__ == "__main__":
    # Small shapes that still exercise every grid axis:
    #   nq = 2 (query blocks), nh = 2 (head blocks, d=128), nf = 2 (FFN chunks).
    B, S, H, n_head, n_ff = 2, 16, 256, 2, 512
    key = jax.random.PRNGKey(0)
    keys = jax.random.split(key, 17)

    def w(k, shape, scale=0.03):
        return (scale * jax.random.normal(k, shape)).astype(jnp.float32)

    params = {
        "wq": w(keys[0], (H, H)), "bq": w(keys[1], (H,)),
        "wk": w(keys[2], (H, H)), "bk": w(keys[3], (H,)),
        "wv": w(keys[4], (H, H)), "bv": w(keys[5], (H,)),  # dead (module bug)
        "wo": w(keys[6], (H, H)), "bo": w(keys[7], (H,)),
        "g1": 1.0 + w(keys[8], (H,)), "beta1": w(keys[9], (H,)),
        "w1": w(keys[10], (n_ff, H)), "b1": w(keys[11], (n_ff,)),
        "w2": w(keys[12], (H, n_ff)), "b2": w(keys[13], (H,)),
        "g2": 1.0 + w(keys[14], (H,)), "beta2": w(keys[15], (H,)),
    }

    x = jax.random.normal(keys[16], (B, S, H), dtype=jnp.float32)

    # Compact masks (broadcastable to (B, n_head, S, S), as in the module):
    # causal additive mask shared by all batches/heads, per-batch key validity.
    causal = jnp.where(
        jnp.arange(S)[:, None] >= jnp.arange(S)[None, :], 0.0, -1e9
    ).astype(jnp.float32)
    attention_mask = causal[None, None]                              # (1,1,S,S)

    valid = jnp.stack([jnp.ones((S,)),
                       jnp.concatenate([jnp.ones((S - 2,)), jnp.zeros((2,))])])
    padding_mask = valid[:, None, None, :].astype(jnp.float32)       # (B,1,1,S)

    out, scores = transformer_layer(
        x, attention_mask, padding_mask, params, n_head=n_head, tq=8, tf=256)
    out = jax.block_until_ready(out)
    scores = jax.block_until_ready(scores)

    ref_out, ref_scores = reference(
        x, attention_mask, padding_mask, params, n_head=n_head)

    # bf16 scores output + bf16 MXU operands (f32 accumulation) vs f32-HIGHEST ref.
    scores_f32 = scores.astype(jnp.float32)
    assert jnp.allclose(scores_f32, ref_scores, rtol=2e-2, atol=2e-2), \
        float(jnp.max(jnp.abs(scores_f32 - ref_scores)))
    assert jnp.allclose(out, ref_out, rtol=2e-2, atol=2e-2), \
        float(jnp.max(jnp.abs(out - ref_out)))

    print("KERNEL_OK")
</pallas_src>

<mosaic_0001>
module attributes {stable_mosaic.version = 11 : i64} {
  func.func @_kproj_kernel(%arg0: i32, %arg1: i32, %arg2: i32, %arg3: memref<1x8x256xf32, #tpu.memory_space<vmem>>, %arg4: memref<256x128xbf16, #tpu.memory_space<vmem>>, %arg5: memref<1x128xf32, #tpu.memory_space<vmem>>, %arg6: memref<1x1x8x128xbf16, #tpu.memory_space<vmem>>) attributes {dimension_semantics = [#tpu.dimension_semantics<parallel>, #tpu.dimension_semantics<parallel>, #tpu.dimension_semantics<arbitrary>], iteration_bounds = array<i64: 2, 2, 2>, scalar_prefetch = 0 : i64, scratch_operands = 0 : i64, tpu.core_type = #tpu.core_type<tc>, window_params = [{transform_indices = @transform_0, window_bounds = array<i64: 1, 8, 256>}, {transform_indices = @transform_1, window_bounds = array<i64: 256, 128>}, {transform_indices = @transform_2, window_bounds = array<i64: 1, 128>}, {transform_indices = @transform_3, window_bounds = array<i64: 1, 1, 8, 128>}]} {
    %c0 = arith.constant 0 : index
    %c0_0 = arith.constant 0 : index
    %c0_1 = arith.constant 0 : index
    %0 = vector.load %arg3[%c0, %c0_0, %c0_1] : memref<1x8x256xf32, #tpu.memory_space<vmem>>, vector<1x8x256xf32>
    %1 = vector.shape_cast %0 : vector<1x8x256xf32> to vector<8x256xf32>
    %2 = arith.truncf %1 : vector<8x256xf32> to vector<8x256xbf16>
    %c0_2 = arith.constant 0 : index
    %c0_3 = arith.constant 0 : index
    %3 = vector.load %arg4[%c0_2, %c0_3] : memref<256x128xbf16, #tpu.memory_space<vmem>>, vector<256x128xbf16>
    %cst = arith.constant dense<0.000000e+00> : vector<8x128xf32>
    %4 = tpu.matmul %2, %3, %cst {dimension_numbers = #tpu.dot_dimension_numbers<[1], [0], [0], [1], [0, 0, 1, 1], [], []>} : vector<8x256xbf16>, vector<256x128xbf16>, vector<8x128xf32> -> vector<8x128xf32>
    %c0_4 = arith.constant 0 : index
    %c0_5 = arith.constant 0 : index
    %5 = vector.load %arg5[%c0_4, %c0_5] : memref<1x128xf32, #tpu.memory_space<vmem>>, vector<1x128xf32>
    %6 = vector.broadcast %5 : vector<1x128xf32> to vector<8x128xf32>
    %7 = arith.addf %4, %6 : vector<8x128xf32>
    %8 = vector.shape_cast %7 : vector<8x128xf32> to vector<8x1x128xf32>
    %9 = tpu.transpose %8, [1, 0, 2] : vector<8x1x128xf32> -> vector<1x8x128xf32>
    %10 = arith.truncf %9 : vector<1x8x128xf32> to vector<1x8x128xbf16>
    %c0_6 = arith.constant 0 : index
    %c0_7 = arith.constant 0 : index
    %c0_8 = arith.constant 0 : index
    %c0_9 = arith.constant 0 : index
    %11 = vector.load %arg6[%c0_6, %c0_7, %c0_8, %c0_9] : memref<1x1x8x128xbf16, #tpu.memory_space<vmem>>, vector<1x1x8x128xbf16>
    %12 = vector.shape_cast %11 : vector<1x1x8x128xbf16> to vector<1x8x128xbf16>
    %13 = vector.shape_cast %10 : vector<1x8x128xbf16> to vector<1x1x8x128xbf16>
    tpu.vector_store %arg6[%c0_6, %c0_7, %c0_8, %c0_9], %13 {strides = array<i32>} : memref<1x1x8x128xbf16, #tpu.memory_space<vmem>>, vector<1x1x8x128xbf16>,
    return
  }
  func.func @transform_0(%arg0: i32, %arg1: i32, %arg2: i32) -> (i32, i32, i32) {
    %c0_i32 = arith.constant 0 : i32
    %c0_i32_0 = arith.constant 0 : i32
    return %arg0, %arg1, %c0_i32 : i32, i32, i32
  }
  func.func @transform_1(%arg0: i32, %arg1: i32, %arg2: i32) -> (i32, i32) {
    %c0_i32 = arith.constant 0 : i32
    %c0_i32_0 = arith.constant 0 : i32
    return %c0_i32, %arg2 : i32, i32
  }
  func.func @transform_2(%arg0: i32, %arg1: i32, %arg2: i32) -> (i32, i32) {
    %c0_i32 = arith.constant 0 : i32
    %c0_i32_0 = arith.constant 0 : i32
    return %c0_i32, %arg2 : i32, i32
  }
  func.func @transform_3(%arg0: i32, %arg1: i32, %arg2: i32) -> (i32, i32, i32, i32) {
    %c0_i32 = arith.constant 0 : i32
    %c0_i32_0 = arith.constant 0 : i32
    return %arg0, %arg2, %arg1, %c0_i32 : i32, i32, i32, i32
  }
}

</mosaic_0001>

<bundles_post_ra>
// kernel: tpu_custom_call.1
= control target key start
LH: loop header
LB: loop body
LE: loop exit
PB: predicated region body
PF: predicated region fallthrough
CT: control target
= control target key end

     0   :  { %s1486_s0 = inlined_call_operand.hbm [shape: f32[2,16,256], index: 0, kind: input, shape index: {}]   ;;  %s1487_s1 = inlined_call_operand.hbm [shape: bf16[256,256], index: 1, kind: input, shape index: {}]   ;;  %s1488_s2 = inlined_call_operand.hbm [shape: f32[1,256], index: 2, kind: input, shape index: {}]   ;;  %s1489_s3 = inlined_call_operand.hbm [shape: bf16[2,2,16,128], index: 3, kind: output, shape index: {}]  }
   0x1   :  { %1503 = sst [smem:[#allocation28_spill]] %s1487_s1 }
   0x2   :  { %1504 = sst [smem:[#allocation29_spill]] %s1489_s3 }
   0x3   :  { %8 = vsyncpa [#allocation3], 0 }
   0x4   :  { %10 = vsyncpa [#allocation3 + $0x1], 0 }
   0x5   :  { %11 = vsyncpa [#allocation6], 0 }
   0x6   :  { %13 = vsyncpa [#allocation6 + $0x1], 0 }
   0x7   :  { %14 = vsyncpa [#allocation4], 0 }
   0x8   :  { %16 = vsyncpa [#allocation4 + $0x1], 0  ;;  %s1168_s12 = smov 0   ;;  %s1170_s13 = smov 0  }
   0x9   :  { %s1172_s14 = smov 0   ;;  %s1174_s15 = smov 0  }
   0xa   :  { %s1176_s16 = smov 0   ;;  %s1178_s17 = smov 0  }
   0xb   :  { %s1180_s18 = smov 0   ;;  %s1182_s19 = smov 0  }
   0xc   :  { %s1184_s20 = smov 0   ;;  %s1186_s21 = smov 0  }
   0xd   :  { %s1188_s22 = smov 0   ;;  %s1190_s23 = smov 0  }
   0xe   :  { %s1192_s24 = smov 0   ;;  %s1194_s25 = smov 0  }
   0xf   :  { %s1196_s26 = smov 0   ;;  %s1198_s27 = smov 0  }
  0x10 LB: > { %1505 = sst [smem:[#allocation12_spill]] %s1091_s14  ;;  %p58_p0 = scmp.eq.s32.totalorder %s1143_s27, 0  ;;  %s1143_s27 = sphi %s1198_s27, %s22_s27   ;;  %s1139_s26 = sphi %s1196_s26, %s1562_s26   ;;  %s1135_s25 = sphi %s1194_s25, %s1561_s25   ;;  %s1131_s24 = sphi %s1192_s24, %s1560_s24   ;;  %s1127_s23 = sphi %s1190_s23, %s1559_s23   ;;  %s1123_s22 = sphi %s1188_s22, %s1547_s22   ;;  %s1119_s21 = sphi %s1186_s21, %s1558_s21   ;;  %s1115_s20 = sphi %s1184_s20, %s1546_s20   ;;  %s1111_s19 = sphi %s1182_s19, %s1557_s19   ;;  %s1107_s18 = sphi %s1180_s18, %s1556_s18   ;;  %s1103_s17 = sphi %s1178_s17, %s1555_s17   ;;  %s1099_s16 = sphi %s1176_s16, %s1554_s16   ;;  %s1095_s15 = sphi %s1174_s15, %s1543_s15   ;;  %s1091_s14 = sphi %s1172_s14, %s1542_s14   ;;  %s1087_s13 = sphi %s1170_s13, %s1553_s13   ;;  %s1083_s12 = sphi %s1168_s12, %s1552_s12  }
  0x11   : > { %1506 = sst [smem:[#allocation13_spill]] %s1099_s16  ;;  %p83_p1 = scmp.ne.s32.totalorder %s1103_s17, %s1099_s16 }
  0x12   : > { %1507 = sst [smem:[#allocation14_spill]] %s1115_s20  ;;  %p753_p2 = scmp.lt.s32.totalorder %s1143_s27, 8 }
  0x13   : > { %1508 = sst [smem:[#allocation15_spill]] %s1119_s21  ;;  %s191_s29 = sand.u32 1, %s1143_s27  }
  0x14   : > { %1509 = sst [smem:[#allocation16_spill]] %s1123_s22  ;;  %p85_p3 = por %p83_p1, %p58_p0 }
  0x15   : > { %1510 = sst [smem:[#allocation17_spill]] %s1127_s23  ;;  %s1490_s30 = sand.u32 1, %s1103_s17  }
  0x16   : > { %1511 = sst [smem:[#allocation18_spill]] %s1135_s25  ;;  %s640_s4 = sshll.u32 %s1131_s24, 2 }
  0x17   : > { %1512 = sst [smem:[#allocation19_spill]] %s1139_s26  ;;  %s639_s5 = sshll.u32 %s1490_s30, 7 }
  0x18   : > { %s1513_s1 = sld [smem:[#allocation28_spill]]  ;;  %s195_s10 = scalar_lea.vmem [#allocation5], %s639_s5 }
  0x19   : > { %s202_s11 = sshll.u32 %s195_s10, 4  ;;  %p1265_p4 = pnand %p753_p2, %p85_p3  ;;  %s203_s11 = int_to_ptr.vmem [resolvable:$true] %s202_s11 }
  0x1a   : > { %s1269_s30 = scalar_lea.sflag [#allocation6], %s191_s29  ;;  %s1146_s6 = smov 64  }
  0x1b   : > { %s1147_s5 = smov 4   ;;  %p641_p5 = scmp.ge.s32.totalorder %s1143_s27, 1 }
  0x1c   : > { %p227_p6 = scmp.lt.s32.totalorder %s1143_s27, 9  ;;  %s1281_s29 = sadd.s32 4294967295, %s1143_s27  }
  0x1d   : > { %s34_s10 = sadd.s32 1, %s1131_s24  ;;  %s41_s3 = sadd.s32 1, %s1139_s26 }
  0x1e   : > { %s199_s8 = scalar_lea.hbm %s1513_s1, %s640_s4  ;;  %s1145_s4 = smov 128  }
  0x1f   : > { %s200_s9 = sshll.u32 %s199_s8, 4  ;;  %p1276_p7 = pnand %p641_p5, %p227_p6  ;;  %s201_s9 = int_to_ptr.hbm [resolvable:$true] %s200_s9 }
  0x20   : > { %745 = dma.hbm_to_vmem [thread:$0]  (!%p1265_p4), %s201_s9, 2048, %s203_s11, %s1269_s30, %s1145_s4, %s1146_s6, %s1147_s5  }
  0x21   : > { %p35_p8 = scmp.ge.s32.totalorder %s34_s10, 2  ;;  %s37_s1 = sadd.s32 1, %s1135_s25 }
  0x22   : > { %s50_s9 = sadd.s32 1, %s1115_s20  ;;  %p57_p9 = scmp.ne.s32.totalorder %s1115_s20, %s1111_s19 }
  0x23   : > { %s1564_s10 = smov (%p35_p8, %s34_s10), 0  ;;  %s1566_s1 = smov (!%p35_p8, %s37_s1), %s1135_s25 }
  0x24   : > { %1516 = sst [smem:[#allocation20_spill]] %s1564_s10  ;;  %p63_p10 = scmp.ne.s32.totalorder %s1111_s19, %s1107_s18 }
  0x25   : > { %p39_p11 = scmp.ge.s32.totalorder %s1566_s1, 2  ;;  %p64_p12 = scmp.eq.s32.totalorder %s1281_s29, 0 }
  0x26   : > { %p1298_p13 = por %p58_p0, %p57_p9  ;;  %s73_s4 = ssub.s32 %s1131_s24, %s1564_s10 }
  0x27   : > { %s1568_s1 = smov (%p39_p11, %s1566_s1), 0  ;;  %s1570_s3 = smov (!%p39_p11, %s41_s3), %s1139_s26 }
  0x28   : > { %1518 = sst [smem:[#allocation21_spill]] %s1568_s1  ;;  %s46_s6 = ssub.s32 %s1135_s25, %s1568_s1 }
  0x29   : > { %p1311_p1 = por %p64_p12, %p63_p10  ;;  %p43_p3 = scmp.ge.s32.totalorder %s1570_s3, 2 }
  0x2a   : > { %p74_p0 = scmp.eq.s32.totalorder %s73_s4, 0  ;;  %p89_p5 = scmp.ne.s32.totalorder %s1099_s16, %s1095_s15 }
  0x2b   : > { %s132_s5 = sadd.s32 1, %s1091_s14  ;;  %s1572_s3 = smov (%p43_p3, %s1570_s3), 0 }
  0x2c   : > { %1520 = sst [smem:[#allocation22_spill]] %s1572_s3  ;;  %s1521_s8 = sadd.s32 1, %s1103_s17 }
  0x2d   : > { %s1323_s1 = scalar_select %p74_p0, %s1103_s17, %s1521_s8  }
  0x2e   : > { %s45_s10 = ssub.s32 %s1139_s26, %s1572_s3  ;;  %p1329_p6 = por %p89_p5, %p64_p12 }
  0x2f   : > { %1522 = sst [smem:[#allocation23_spill]] %s1323_s1  ;;  %s47_s22 = sor.u32 %s46_s6, %s45_s10 }
  0x30   : > { %s1523_s23 = scalar_select %p1329_p6, 1, 0 }
  0x31   : > { %s127_s21 = sor.u32 %s73_s4, %s45_s10  ;;  %p48_p8 = scmp.eq.s32.totalorder %s47_s22, 0 }
  0x32   : > { %1524 = sst [smem:[#allocation24_spill]] %s1523_s23  ;;  %s129_s15 = sor.u32 %s127_s21, %s46_s6 }
  0x33   : > { %p130_p9 = scmp.eq.s32.totalorder %s129_s15, 0  ;;  %p142_p10 = scmp.ne.s32.totalorder %s1091_s14, %s1087_s13 }
  0x34   : > { %s1336_s16 = scalar_select %p48_p8, %s1115_s20, %s50_s9  }
  0x35   : > { %s1339_s8 = scalar_select %p130_p9, %s1091_s14, %s132_s5  }
  0x36   : > { %1525 = sst [smem:[#allocation25_spill]] %s1336_s16  ;;  %p143_p11 = scmp.eq.s32.totalorder %s1281_s29, 7 }
  0x37   : > { %1526 = sst [smem:[#allocation26_spill]] %s1339_s8  ;;  %p148_p3 = scmp.ne.s32.totalorder %s1087_s13, %s1083_s12 }
  0x38   : > { %s1527_s3 = sadd.s32 4294967294, %s1143_s27   ;;  %s169_s1 = sand.u32 1, %s1115_s20  }
  0x39   : > { %p149_p12 = scmp.eq.s32.totalorder %s1527_s3, 7  ;;  %p1347_p0 = por %p143_p11, %p142_p10 }
  0x3a   : > { %s635_s22 = sshll.u32 %s169_s1, 4  ;;  %s636_s10 = sshll.u32 %s1135_s25, 1 }
  0x3b   : > { %p1351_p5 = por %p149_p12, %p148_p3  ;;  %s637_s9 = sshll.u32 %s1139_s26, 2 }
  0x3c   : > { %s173_s4 = scalar_lea.vmem [#allocation2], %s635_s22  ;;  %s178_s5 = sadd.s32 %s637_s9, %s636_s10 }
  0x3d   : > { %s1529_s21 = scalar_select %p1351_p5, 1, 0 }
  0x3e   : > { %s184_s6 = sshll.u32 %s173_s4, 4  ;;  %s638_s3 = sshll.u32 %s178_s5, 3  ;;  %s185_s6 = int_to_ptr.vmem [resolvable:$true] %s184_s6 }
  0x3f   : > { %1530 = sst [smem:[#allocation27_spill]] %s1529_s21  ;;  %p740_p8 = pnand %p753_p2, %p1298_p13 }
  0x40   : > { %s180_s20 = scalar_lea.hbm %s1486_s0, %s638_s3  ;;  %s218_s26 = scalar_lea.hbm %s1488_s2, %s1131_s24 }
  0x41   : > { %s182_s8 = sshll.u32 %s180_s20, 4  ;;  %s170_s22 = scalar_lea.sflag [#allocation3], %s169_s1  ;;  %s183_s8 = int_to_ptr.hbm [resolvable:$true] %s182_s8 }
  0x42   : > { %742 = dma.hbm_to_vmem [thread:$0]  (!%p740_p8), %s183_s8, 256, %s185_s6, %s170_s22  }
  0x43   : > { %s220_s4 = sshll.u32 %s218_s26, 4  ;;  %s1531_s25 = sand.u32 1, %s1103_s17   ;;  %s221_s4 = int_to_ptr.hbm [resolvable:$true] %s220_s4 }
  0x44   : > { %s215_s10 = scalar_lea.vmem [#allocation7], %s1531_s25  ;;  %231 = sbr.rel (%p1276_p7) target bundleno = 267 (0x10b), region = 32 }
  0x45   : > { %s222_s9 = sshll.u32 %s215_s10, 4  ;;  %s233_s16 = sand.u32 (!%p1276_p7), 1, %s1111_s19   ;;  %s223_s9 = int_to_ptr.vmem [resolvable:$true] %s222_s9 }
  0x46   : > { %748 = dma.hbm_to_vmem [thread:$0]  (!%p1265_p4), %s221_s4, 16, %s223_s9, %s1269_s30  }
  0x47   : > { %s1376_s20 = sshll.u32 (!%p1276_p7), %s233_s16, 4  ;;  %s234_s14 = scalar_lea.sflag (!%p1276_p7), [#allocation3], %s233_s16 }
  0x48   : > { %s237_s1 = scalar_lea.vmem (!%p1276_p7), [#allocation2], %s1376_s20 }
  0x49   : > { %1070 = dma.done.wait (%p1311_p1), %s234_s14, 256  }
  0x4a   : > { %1072 = vsyncadd (%p1311_p1), %s234_s14, 4294967040  ;;  %s1532_s25 = sld [smem:[#allocation13_spill]]  ;;  %s243_s28 = sand.u32 1, %s1281_s29  }
  0x4b   : > { %s244_s11 = scalar_lea.sflag [#allocation6], %s243_s28 }
  0x50   : > { %s245_s30 = sand.u32 1, %s1532_s25  }
  0x51   : > { %s643_s7 = sshll.u32 %s245_s30, 7 }
  0x52   : > { %s1385_s8 = scalar_lea.vmem [#allocation5], %s643_s7 }
  0x53   : > { %1074 = dma.done.wait (%p1329_p6), %s244_s11, 2064  }
  0x54   : > { %1076 = vsyncadd (%p1329_p6), %s244_s11, 4294965232  ;;  %v722_v0 = vld [vmem:[%s1385_s8 + $0x38] sm:$0xff]  ;;  %v721_v2 = vld [vmem:[%s1385_s8 + $0x30] sm:$0xff]  ;;  %s256_s29 = scalar_lea.vmem [#allocation7], %s245_s30  ;;  %s1534_s18 = sld [smem:[#allocation15_spill]] }
  0x55   : > { %v730_v1 = vld [vmem:[%s1385_s8 + $0x78] sm:$0xff]  ;;  %425 = vmatpush.bf16.msra.mxu0 %v722_v0  ;;  %v729_v3 = vld [vmem:[%s1385_s8 + $0x70] sm:$0xff]  ;;  %v720_v4 = vld [vmem:[%s1385_s8 + $0x28] sm:$0xff]  ;;  %s1535_s21 = sld [smem:[#allocation16_spill]]  ;;  %s286_s22 = sand.u32 1, %s1087_s13  }
  0x56   : > { %438 = vmatpush.bf16.msra.mxu1 %v730_v1  ;;  %v728_v5 = vld [vmem:[%s1385_s8 + $0x68] sm:$0xff]  ;;  %v719_v6 = vld [vmem:[%s1385_s8 + $0x20] sm:$0xff]  ;;  %v718_v8 = vld [vmem:[%s1385_s8 + $0x18] sm:$0xff]  ;;  %s1536_s6 = sld [smem:[#allocation17_spill]]  ;;  %s644_s10 = sshll.u32 %s286_s22, 2 }
  0x57   : > { %v727_v7 = vld [vmem:[%s1385_s8 + $0x60] sm:$0xff]  ;;  %v726_v9 = vld [vmem:[%s1385_s8 + $0x58] sm:$0xff]  ;;  %v717_v10 = vld [vmem:[%s1385_s8 + $0x10] sm:$0xff]  ;;  %s1537_s14 = sld [smem:[#allocation29_spill]]  ;;  %s288_s26 = scalar_lea.vmem [#allocation8], %s644_s10 }
  0x58   : > { %v725_v11 = vld [vmem:[%s1385_s8 + $0x50] sm:$0xff]  ;;  %v716_v12 = vld [vmem:[%s1385_s8 + $0x8] sm:$0xff]  ;;  %v715_v14 = vld [vmem:[%s1385_s8] sm:$0xff]  ;;  %s495_s28 = sshll.u32 %s288_s26, 4  ;;  %s479_s7 = scalar_lea.sflag [#allocation4], %s286_s22  ;;  %s496_s28 = int_to_ptr.vmem [resolvable:$true] %s495_s28 }
  0x59   : > { %426 = vmatpush.bf16.msra.mxu0 %v721_v2  ;;  %v724_v13 = vld [vmem:[%s1385_s8 + $0x48] sm:$0xff]  ;;  %v723_v15 = vld [vmem:[%s1385_s8 + $0x40] sm:$0xff]  ;;  %v886_v20 = vld [vmem:[%s256_s29] ss:$0 sm:$0xff] }
  0x5a   : > { %439 = vmatpush.bf16.msra.mxu1 %v729_v3  ;;  %v289_v16 = vld [vmem:[%s237_s1] sm:$0xff]  ;;  %v290_v17 = vld [vmem:[%s237_s1 + $0x8] sm:$0xff]  ;;  %s710_s5 = sshll.u32 %s1534_s18, 1 }
  0x5b   : > { %v291_v18 = vpack.c.bf16 %v289_v16, %v289_v16  ;;  %v292_v19 = vpack.c.bf16 %v290_v17, %v290_v17  ;;  %s489_s3 = sadd.s32 %s1535_s21, %s710_s5 }
  0x5c   : > { %s711_s15 = sshll.u32 %s1536_s6, 2 }
  0x5d   : > { %427 = vmatpush.bf16.msra.mxu0 %v720_v4  ;;  %s491_s4 = sadd.s32 %s711_s15, %s489_s3  ;;  %s1538_s1 = smov %s1537_s14 }
  0x5e   : > { %440 = vmatpush.bf16.msra.mxu1 %v728_v5  ;;  %s712_s9 = sshll.u32 %s491_s4, 2  ;;  %s997_s21 = scalar_lea.hbm %s1538_s1, 32 }
  0x5f   : > { %s493_s25 = scalar_lea.hbm %s1537_s14, %s712_s9 }
  0x60   : > { %s497_s30 = sshll.u32 %s493_s25, 4  ;;  %s498_s30 = int_to_ptr.hbm [resolvable:$true] %s497_s30 }
  0x61   : > { %428 = vmatpush.bf16.msra.mxu0 %v719_v6  ;;  %s991_s11 = sshra.s32 %s498_s30, 4  ;;  %s992_s11 = int_to_ptr.hbm [resolvable:$true] %s991_s11 }
  0x62   : > { %441 = vmatpush.bf16.msra.mxu1 %v727_v7  ;;  %s993_s8 = scalar_lea.hbm %s992_s11, 4  ;;  %p998_p13 = scmp.lt.s32.totalorder %s992_s11, %s1538_s1 }
  0x63   : > { %p994_p2 = scmp.ne.s32.totalorder %s992_s11, %s993_s8  ;;  %p999_p1 = scmp.lt.s32.totalorder %s997_s21, %s993_s8 }
  0x65   : > { %429 = vmatpush.bf16.msra.mxu0 %v718_v8  ;;  %p995_p4 = pnand %p994_p2, %p1347_p0  ;;  %p1000_p6 = por %p999_p1, %p998_p13 }
  0x66   : > { %442 = vmatpush.bf16.msra.mxu1 %v726_v9 }
  0x67   : > { %p996_p7 = pneg %p995_p4 }
  0x69   : > { %430 = vmatpush.bf16.msra.mxu0 %v717_v10  ;;  %p1001_p9 = pnand %p1000_p6, %p996_p7 }
  0x6a   : > { %443 = vmatpush.bf16.msra.mxu1 %v725_v11 }
  0x6d   : > { %431 = vmatpush.bf16.msra.mxu0 %v716_v12 }
  0x6e   : > { %444 = vmatpush.bf16.msra.mxu1 %v724_v13 }
  0x71   : > { %432 = vmatpush.bf16.msra.mxu0 %v715_v14 }
  0x72   : > { %445 = vmatpush.bf16.msra.mxu1 %v723_v15 }
  0x74   : > { %433 = vmatmul.bf16.vlgmr.msra.gmra.mxu0 %v291_v18 }
  0x75   : > { %446 = vmatmul.bf16.vlgmr.msra.gmra.mxu1 %v292_v19 }
  0xf1   : > { %v434_v21 = vpop.f32.mrf.mxu0 }
  0xf2   : > { %v447_v22 = vpop.f32.mrf.mxu1  ;;  %v435_v23 = vadd.f32 %v886_v20, %v434_v21 }
  0xf4   : > { %v448_v24 = vadd.f32 %v447_v22, %v435_v23 }
  0xf6   : > { %v452_v25 = vrot.slane %v448_v24, 1  ;;  %v453_v26 = vrot.slane %v448_v24, 2  ;;  %v454_v27 = vrot.slane %v448_v24, 3  ;;  %459 = vst [vmem:[#allocation1] ss:$9 sm:$0xff] %v448_v24  ;;  %v455_v28 = vrot.slane %v448_v24, 4 }
  0xf7   : > { %v456_v29 = vrot.slane %v448_v24, 5  ;;  %v457_v30 = vrot.slane %v448_v24, 6  ;;  %v458_v33 = vrot.slane %v448_v24, 7 }
  0xf8   : > { %461 = vst [vmem:[#allocation1 + $0x1] ss:$9 sm:$0xff] %v452_v25 }
  0xf9   : > { %463 = vst [vmem:[#allocation1 + $0x2] ss:$9 sm:$0xff] %v453_v26  ;;  %v436_v31 = vpop.f32.mrf.mxu0 }
  0xfa   : > { %v449_v32 = vpop.f32.mrf.mxu1  ;;  %465 = vst [vmem:[#allocation1 + $0x3] ss:$9 sm:$0xff] %v454_v27 }
  0xfb   : > { %467 = vst [vmem:[#allocation1 + $0x4] ss:$9 sm:$0xff] %v455_v28 }
  0xfc   : > { %469 = vst [vmem:[#allocation1 + $0x5] ss:$9 sm:$0xff] %v456_v29 }
  0xfd   : > { %471 = vst [vmem:[#allocation1 + $0x6] ss:$9 sm:$0xff] %v457_v30 }
  0xfe   : > { %473 = vst [vmem:[#allocation1 + $0x7] ss:$9 sm:$0xff] %v458_v33 }
 0x105   : > { %v474_v34 = vld [vmem:[#allocation1] sm:$0xff] }
 0x106   : > { %v476_v35 = vpack.c.bf16 %v474_v34, %v474_v34 }
 0x108   : > { %477 = vst [vmem:[%s288_s26] sm:$0xf] %v476_v35 }
 0x109   : > { %1004 = shalt.err (!%p1001_p9)
}
 0x10a   : > { %737 = dma.vmem_to_hbm [thread:$0]  (%p1347_p0), %s496_s28, 64, %s498_s30, %s479_s7  }
 0x10b PF: > { %p754_p10 = scmp.ge.s32.totalorder %s1143_s27, 2  ;;  %s509_s15 = sand.u32 1, %s1083_s12  }
 0x10c   : > { %s510_s22 = scalar_lea.sflag [#allocation4], %s509_s15 }
 0x10d   : > { %p750_p11 = pnand %p754_p10, %p1351_p5 }
 0x10f   : > { %p751_p3 = pneg %p750_p11 }
 0x111   : > { %1078 = dma.done.wait (%p751_p3), %s510_s22, 64  }
 0x112   : > { %1080 = vsyncadd (%p751_p3), %s510_s22, 4294967232  ;;  %s22_s27 = sadd.s32 1, %s1143_s27   ;;  %s1541_s23 = sld [smem:[#allocation12_spill]] }
 0x113   : > { %p1433_p12 = scmp.ge.s32.totalorder %s22_s27, 10   ;;  %s1542_s14 = sld [smem:[#allocation26_spill]] }
 0x114   : > { %s1543_s15 = sld [smem:[#allocation13_spill]]  ;;  %s1552_s12 = smov %s1087_s13 }
 0x115   : > { %s1544_s10 = sld [smem:[#allocation23_spill]]  ;;  %s1554_s16 = smov %s1103_s17 }
 0x116   : > { %s1545_s9 = sld [smem:[#allocation14_spill]]  ;;  %s1556_s18 = smov %s1111_s19 }
 0x117   : > { %s1546_s20 = sld [smem:[#allocation25_spill]]  ;;  %s1558_s21 = smov %s1131_s24 }
 0x118   : > { %s1547_s22 = sld [smem:[#allocation18_spill]]  ;;  %s1553_s13 = smov %s1541_s23 }
 0x119   : > { %s1548_s25 = sld [smem:[#allocation19_spill]] }
 0x11a   : > { %s1549_s26 = sld [smem:[#allocation20_spill]] }
 0x11b   : > { %s1550_s28 = sld [smem:[#allocation21_spill]]  ;;  %s1555_s17 = smov %s1544_s10 }
 0x11c   : > { %s1551_s30 = sld [smem:[#allocation22_spill]]  ;;  %s1557_s19 = smov %s1545_s9 }
 0x11e   :  { %21 = sbr.rel (!%p1433_p12) target bundleno = 16 (0x10), region = 108 }
 0x11f   : > { %s1559_s23 = smov %s1548_s25 }
 0x120   : > { %s1560_s24 = smov %s1549_s26 }
 0x121   : > { %s1561_s25 = smov %s1550_s28 }
 0x122   : > { %s1562_s26 = smov %s1551_s30 }
 0x123   :  { %516 = vsyncpa [#allocation3], 1 }
 0x124   :  { %518 = vsyncpa [#allocation3 + $0x1], 1 }
 0x125   :  { %519 = vsyncpa [#allocation6], 1 }
 0x126   :  { %521 = vsyncpa [#allocation6 + $0x1], 1 }
 0x127   :  { %522 = vsyncpa [#allocation4], 1 }
 0x128   :  { %524 = vsyncpa [#allocation4 + $0x1], 1 }

</bundles_post_ra>
